<compile_context>
chip_gen: v5e
topology: v5e:2x2
jax: 0.10.0
libtpu: 0.0.40
codegen_flags: <defaults>
</compile_context>

<pallas_src>
import functools

import jax
import jax.numpy as jnp
from jax import lax
from jax.experimental import pallas as pl
from jax.experimental.pallas import tpu as pltpu


def _round_up(x, m):
    return (x + m - 1) // m * m


# ----------------------------------------------------------------------------
# Bilinear resize (glue) — matches torch F.interpolate(mode='bilinear',
# align_corners=False) via separable interpolation matrices.
# ----------------------------------------------------------------------------
def _bilinear_matrix(out_size, in_size):
    if out_size == in_size:
        return jnp.eye(out_size, dtype=jnp.float32)
    dst = jnp.arange(out_size, dtype=jnp.float32)
    src = (dst + 0.5) * (in_size / out_size) - 0.5
    src = jnp.clip(src, 0.0, float(in_size - 1))
    lo = jnp.floor(src).astype(jnp.int32)
    hi = jnp.minimum(lo + 1, in_size - 1)
    frac = src - lo.astype(jnp.float32)
    rows = jnp.arange(out_size)
    mat = jnp.zeros((out_size, in_size), jnp.float32)
    mat = mat.at[rows, lo].add(1.0 - frac)
    mat = mat.at[rows, hi].add(frac)
    return mat


def bilinear_resize_nchw(x, out_hw):
    h_out, w_out = out_hw
    h_in, w_in = x.shape[-2:]
    a_h = _bilinear_matrix(h_out, h_in)
    a_w = _bilinear_matrix(w_out, w_in)
    return jnp.einsum("ah,nchw,bw->ncab", a_h, x.astype(jnp.float32), a_w)


# ----------------------------------------------------------------------------
# Pallas kernels
# ----------------------------------------------------------------------------
def _scatter_avg_kernel(enc_ref, samples_ref, inv_ref, table_ref):
    """index_put_(accumulate=True) + count-normalisation, channel-major.

    grid = (K tiles [parallel], N tiles [reduction, last]).
      enc_ref     : (tile_n, 1) int32  — pixel ids, N on sublanes
      samples_ref : (C, tile_n)        — channel-major samples (lane-dense)
      inv_ref     : (1, tile_k) f32    — 1/counts (1.0 where count == 0)
      table_ref   : (C, tile_k) f32    — resident accumulator / output
    One-hot is built MXU-RHS-native (N on sublanes, K on lanes), so the dot is
    a plain (C, tile_n) @ (tile_n, tile_k) with no transpose anywhere.
    """
    n = pl.program_id(1)

    @pl.when(n == 0)
    def _init():
        table_ref[...] = jnp.zeros_like(table_ref)

    s = samples_ref[...]                                    # (C, tile_n)
    tile_n = s.shape[1]
    tile_k = table_ref.shape[1]
    k_start = pl.program_id(0) * tile_k
    kk = lax.broadcasted_iota(jnp.int32, (tile_n, tile_k), 1)
    onehot = (kk == (enc_ref[...] - k_start)).astype(s.dtype)    # (tile_n, tile_k)
    table_ref[...] += lax.dot_general(
        s, onehot,
        dimension_numbers=(((1,), (0,)), ((), ())),
        preferred_element_type=jnp.float32)

    @pl.when(n == pl.num_programs(1) - 1)
    def _finalize():
        # counts==0 rows carry inv==1.0 -> identical to
        # torch.where(counts > 0, values / counts, values).
        table_ref[...] = table_ref[...] * inv_ref[...]


def _gather_lookup_kernel(enc_ref, table_ref, out_ref):
    """mixed[:, n] = table[:, enc[n]] as a VMEM-resident lane gather.

    grid = (N tiles [parallel],).  The full (C, Kp) f32 table is resident in
    VMEM (12 bytes / unique pixel), so the gather is O(N*C) instead of O(N*K).
    """
    idx = jnp.maximum(enc_ref[0, :], 0)        # padded -1 rows -> 0 (sliced off)
    out_ref[...] = jnp.take(table_ref[...], idx, axis=1, mode="clip")


def _gather_matmul_kernel(enc_ref, table_ref, out_ref):
    """Fallback gather: K-tiled one-hot matmul (if the lane gather above does
    not lower on this Mosaic version).

    grid = (N tiles [parallel], K tiles [reduction, last]).
      enc_ref   : (1, tile_n) int32
      table_ref : (C, tile_k) f32
      out_ref   : (C, tile_n) f32 — resident accumulator, lane-dense stores
    """
    k = pl.program_id(1)

    @pl.when(k == 0)
    def _init():
        out_ref[...] = jnp.zeros_like(out_ref)

    tile_k = table_ref.shape[1]
    tile_n = enc_ref.shape[1]
    k_start = k * tile_k
    kk = lax.broadcasted_iota(jnp.int32, (tile_k, tile_n), 0)
    onehot = (kk == (enc_ref[...] - k_start)).astype(jnp.float32)  # (tile_k, tile_n)
    out_ref[...] += jnp.dot(table_ref[...], onehot,
                            preferred_element_type=jnp.float32)


# ----------------------------------------------------------------------------
# Gather builders + one-shot lowering probe (fallback if Mosaic rejects gather)
# ----------------------------------------------------------------------------
def _build_lookup_gather(C, Np, Kp, tile_n, num_n):
    return pl.pallas_call(
        _gather_lookup_kernel,
        out_shape=jax.ShapeDtypeStruct((C, Np), jnp.float32),
        grid_spec=pltpu.PrefetchScalarGridSpec(
            num_scalar_prefetch=0,
            grid=(num_n,),
            in_specs=[
                pl.BlockSpec((1, tile_n), lambda n: (0, n)),   # enc row (lanes)
                pl.BlockSpec((C, Kp), lambda n: (0, 0)),       # full table, resident
            ],
            out_specs=pl.BlockSpec((C, tile_n), lambda n: (0, n)),
        ),
        compiler_params=pltpu.CompilerParams(dimension_semantics=("parallel",)),
    )


def _build_matmul_gather(C, Np, Kp, tile_n, tile_k, num_n, num_k):
    return pl.pallas_call(
        _gather_matmul_kernel,
        out_shape=jax.ShapeDtypeStruct((C, Np), jnp.float32),
        grid_spec=pltpu.PrefetchScalarGridSpec(
            num_scalar_prefetch=0,
            grid=(num_n, num_k),                 # N parallel, K reduction last
            in_specs=[
                pl.BlockSpec((1, tile_n), lambda n, k: (0, n)),
                pl.BlockSpec((C, tile_k), lambda n, k: (0, k)),
            ],
            out_specs=pl.BlockSpec((C, tile_n), lambda n, k: (0, n)),
        ),
        compiler_params=pltpu.CompilerParams(
            dimension_semantics=("parallel", "arbitrary")),
    )


@functools.lru_cache(maxsize=None)
def _lookup_gather_supported(C, Np, Kp, tile_n, num_n):
    """Probe-compile the lane-gather kernel once per shape; False -> fallback."""
    try:
        jax.jit(_build_lookup_gather(C, Np, Kp, tile_n, num_n)).lower(
            jax.ShapeDtypeStruct((1, Np), jnp.int32),
            jax.ShapeDtypeStruct((C, Kp), jnp.float32),
        ).compile()
        return True
    except Exception:        # Pallas/Mosaic rejection -> one-hot matmul fallback
        return False


# ----------------------------------------------------------------------------
# Forward wrapper
# ----------------------------------------------------------------------------
def flow_coding_forward(samples, encoded_pixels, counts, *,
                        tile_n=1024, tile_k=256, mxu_dtype=jnp.bfloat16):
    """samples: [T, 3, H0, W0] f32 (NCHW).  encoded_pixels: [1, T, H, W] int.
    counts: [K, 1] int (K = encoded_pixels.max()+1).  Returns [T, 3, H0, W0].

    NOTE: encoded ids must satisfy id < K (module invariant); ids >= K would be
    clamped/dropped here whereas torch index_put_ would error.
    """
    T, C, H0, W0 = samples.shape
    _, Tt, H, W = encoded_pixels.shape
    assert T == Tt and C == 3
    K = counts.shape[0]
    N = T * H * W

    tile_n = min(tile_n, _round_up(N, 128))
    Np = _round_up(N, tile_n)

    K128 = _round_up(K, 128)
    tile_k = min(tile_k, K128)
    if K128 >= 256:          # >= 2 blocks on the scatter's parallel K axis (v7x)
        tile_k = min(tile_k, _round_up((K128 + 1) // 2, 128))
    Kp = _round_up(K128, tile_k)

    num_n = Np // tile_n
    num_k = Kp // tile_k

    # 1) downsample to the coding grid (glue); keep channel-major (lane-dense).
    s = bilinear_resize_nchw(samples, (H, W))                        # [T,C,H,W] f32
    s_cm = jnp.transpose(s, (1, 0, 2, 3)).reshape(C, N)              # (C, N)
    s_cm = jnp.pad(s_cm.astype(mxu_dtype), ((0, 0), (0, Np - N)))

    # Padded pixels get id -1: they match no unique-pixel row in the scatter and
    # gather row 0 into columns that are sliced off afterwards.
    enc = encoded_pixels.reshape(N).astype(jnp.int32)
    enc = jnp.pad(enc, (0, Np - N), constant_values=-1)
    enc_row = enc.reshape(1, Np)        # N on lanes    (gather)
    enc_col = enc.reshape(Np, 1)        # N on sublanes (scatter one-hot RHS)

    cnt = counts.astype(jnp.float32).reshape(1, K)
    inv = jnp.where(cnt > 0, 1.0 / jnp.maximum(cnt, 1.0), 1.0)
    inv_row = jnp.pad(inv, ((0, 0), (0, Kp - K)), constant_values=1.0)

    # 2a) scatter-add + count-normalise -> channel-major table (C, Kp) f32.
    # TODO(synk): fold the K tiling into an in-kernel loop with the full (C, Kp)
    # table resident so enc/samples stream from HBM once instead of num_k times.
    table = pl.pallas_call(
        _scatter_avg_kernel,
        out_shape=jax.ShapeDtypeStruct((C, Kp), jnp.float32),
        grid_spec=pltpu.PrefetchScalarGridSpec(
            num_scalar_prefetch=0,
            grid=(num_k, num_n),                  # K parallel, N reduction last
            in_specs=[
                pl.BlockSpec((tile_n, 1), lambda k, n: (n, 0)),     # enc column
                pl.BlockSpec((C, tile_n), lambda k, n: (0, n)),     # samples
                pl.BlockSpec((1, tile_k), lambda k, n: (0, k)),     # 1/counts
            ],
            out_specs=pl.BlockSpec((C, tile_k), lambda k, n: (0, k)),
        ),
        compiler_params=pltpu.CompilerParams(
            dimension_semantics=("parallel", "arbitrary")),
    )(enc_col, s_cm, inv_row)

    # 2b) gather back per pixel: mixed[:, n] = table[:, enc[n]].
    if _lookup_gather_supported(C, Np, Kp, tile_n, num_n):
        mixed_cm = _build_lookup_gather(C, Np, Kp, tile_n, num_n)(enc_row, table)
    else:
        mixed_cm = _build_matmul_gather(C, Np, Kp, tile_n, tile_k,
                                        num_n, num_k)(enc_row, table)

    mixed = mixed_cm[:, :N].reshape(C, T, H, W).transpose(1, 0, 2, 3)

    # 3) upsample back to the original resolution (glue).
    return bilinear_resize_nchw(mixed, (H0, W0))


# ----------------------------------------------------------------------------
# Pure-JAX reference (f32 end-to-end) for verification
# ----------------------------------------------------------------------------
def _reference(samples, encoded_pixels, counts):
    T, C, H0, W0 = samples.shape
    H, W = encoded_pixels.shape[-2:]
    K = counts.shape[0]
    s = bilinear_resize_nchw(samples, (H, W))
    s_flat = jnp.transpose(s, (0, 2, 3, 1)).reshape(-1, C)
    e = encoded_pixels.reshape(-1)
    vals = jax.ops.segment_sum(s_flat, e, num_segments=K)
    cnt = counts.astype(jnp.float32)
    pix = jnp.where(cnt > 0, vals / jnp.where(cnt > 0, cnt, 1.0), vals)
    mixed = pix[e].reshape(T, H, W, C).transpose(0, 3, 1, 2)
    return bilinear_resize_nchw(mixed, (H0, W0))


if __name__ == "__main__":
    T, C = 2, 3
    H = W = 16          # coding-grid shape (self.shape)
    H0 = W0 = 24        # original sample resolution

    key = jax.random.PRNGKey(0)
    k_enc, k_samp = jax.random.split(key)

    # Synthetic `encoded_pixels` (the module also accepts it directly via the
    # `encoded_pixels is not None` branch of __init__): frame 0 is the identity
    # coding, frame 1 mixes reused and novel unique ids.
    enc0 = jnp.arange(H * W, dtype=jnp.int32).reshape(H, W)
    enc1 = jax.random.randint(k_enc, (H, W), 0, H * W + 64, dtype=jnp.int32)
    encoded_pixels = jnp.stack([enc0, enc1])[None]                # [1, T, H, W]
    n_pixels = int(encoded_pixels.max()) + 1
    counts = jnp.bincount(encoded_pixels.reshape(-1), length=n_pixels)
    counts = counts.reshape(n_pixels, 1).astype(jnp.int32)        # [K, 1]
    assert int(encoded_pixels.max()) < counts.shape[0]            # module invariant

    samples = jax.random.normal(k_samp, (T, C, H0, W0), jnp.float32)

    ref = _reference(samples, encoded_pixels, counts)

    # Strict check: f32 MXU inputs, tight tolerance (catches indexing bugs).
    out_f32 = flow_coding_forward(samples, encoded_pixels, counts,
                                  mxu_dtype=jnp.float32)
    out_f32 = jax.block_until_ready(out_f32)
    assert out_f32.shape == (T, C, H0, W0)
    assert jnp.allclose(out_f32, ref, rtol=1e-4, atol=1e-4)

    # Default (perf) path: bf16 MXU inputs (matching torch's reduced-precision
    # accumulate buffer) -> loose tolerance.
    out = flow_coding_forward(samples, encoded_pixels, counts)
    out = jax.block_until_ready(out)
    assert out.shape == (T, C, H0, W0)
    assert jnp.allclose(out, ref, rtol=5e-2, atol=5e-2)

    print("KERNEL_OK")
</pallas_src>

<mosaic_0001>
module attributes {stable_mosaic.version = 11 : i64} {
  func.func @_scatter_avg_kernel(%arg0: i32, %arg1: i32, %arg2: memref<512x1xi32, #tpu.memory_space<vmem>>, %arg3: memref<3x512xf32, #tpu.memory_space<vmem>>, %arg4: memref<1x256xf32, #tpu.memory_space<vmem>>, %arg5: memref<3x256xf32, #tpu.memory_space<vmem>>) attributes {dimension_semantics = [#tpu.dimension_semantics<parallel>, #tpu.dimension_semantics<arbitrary>], iteration_bounds = array<i64: 2, 1>, scalar_prefetch = 0 : i64, scratch_operands = 0 : i64, tpu.core_type = #tpu.core_type<tc>, window_params = [{transform_indices = @transform_0, window_bounds = array<i64: 512, 1>}, {transform_indices = @transform_1, window_bounds = array<i64: 3, 512>}, {transform_indices = @transform_2, window_bounds = array<i64: 1, 256>}, {transform_indices = @transform_3, window_bounds = array<i64: 3, 256>}]} {
    %c0_i32 = arith.constant 0 : i32
    %0 = arith.cmpi eq, %arg1, %c0_i32 : i32
    %1 = arith.extui %0 : i1 to i32
    %c0_i32_0 = arith.constant 0 : i32
    %2 = arith.cmpi ne, %1, %c0_i32_0 : i32
    scf.if %2 {
      %cst_10 = arith.constant 0.000000e+00 : f32
      %20 = vector.broadcast %cst_10 : f32 to vector<3x256xf32>
      %c0_11 = arith.constant 0 : index
      %c0_12 = arith.constant 0 : index
      %21 = vector.load %arg5[%c0_11, %c0_12] : memref<3x256xf32, #tpu.memory_space<vmem>>, vector<3x256xf32>
      tpu.vector_store %arg5[%c0_11, %c0_12], %20 {strides = array<i32>} : memref<3x256xf32, #tpu.memory_space<vmem>>, vector<3x256xf32>,
    } else {
    }
    %c0 = arith.constant 0 : index
    %c0_1 = arith.constant 0 : index
    %3 = vector.load %arg3[%c0, %c0_1] : memref<3x512xf32, #tpu.memory_space<vmem>>, vector<3x512xf32>
    %c256_i32 = arith.constant 256 : i32
    %4 = arith.muli %arg0, %c256_i32 : i32
    %5 = tpu.iota {dimensions = array<i32: 1>} : vector<512x256xi32>
    %c0_2 = arith.constant 0 : index
    %c0_3 = arith.constant 0 : index
    %6 = vector.load %arg2[%c0_2, %c0_3] : memref<512x1xi32, #tpu.memory_space<vmem>>, vector<512x1xi32>
    %7 = vector.broadcast %4 : i32 to vector<512x1xi32>
    %8 = arith.subi %6, %7 : vector<512x1xi32>
    %9 = vector.broadcast %8 : vector<512x1xi32> to vector<512x256xi32>
    %10 = arith.cmpi eq, %5, %9 : vector<512x256xi32>
    %11 = arith.extui %10 : vector<512x256xi1> to vector<512x256xi32>
    %12 = arith.sitofp %11 : vector<512x256xi32> to vector<512x256xf32>
    %c0_4 = arith.constant 0 : index
    %c0_5 = arith.constant 0 : index
    %13 = vector.load %arg5[%c0_4, %c0_5] : memref<3x256xf32, #tpu.memory_space<vmem>>, vector<3x256xf32>
    %cst = arith.constant dense<0.000000e+00> : vector<3x256xf32>
    %14 = tpu.matmul %3, %12, %cst {dimension_numbers = #tpu.dot_dimension_numbers<[1], [0], [0], [1], [0, 0, 1, 1], [], []>} : vector<3x512xf32>, vector<512x256xf32>, vector<3x256xf32> -> vector<3x256xf32>
    %15 = arith.addf %13, %14 : vector<3x256xf32>
    %c0_6 = arith.constant 0 : index
    %c0_7 = arith.constant 0 : index
    %16 = vector.load %arg5[%c0_6, %c0_7] : memref<3x256xf32, #tpu.memory_space<vmem>>, vector<3x256xf32>
    tpu.vector_store %arg5[%c0_6, %c0_7], %15 {strides = array<i32>} : memref<3x256xf32, #tpu.memory_space<vmem>>, vector<3x256xf32>,
    %c0_i32_8 = arith.constant 0 : i32
    %17 = arith.cmpi eq, %arg1, %c0_i32_8 : i32
    %18 = arith.extui %17 : i1 to i32
    %c0_i32_9 = arith.constant 0 : i32
    %19 = arith.cmpi ne, %18, %c0_i32_9 : i32
    scf.if %19 {
      %c0_10 = arith.constant 0 : index
      %c0_11 = arith.constant 0 : index
      %20 = vector.load %arg5[%c0_10, %c0_11] : memref<3x256xf32, #tpu.memory_space<vmem>>, vector<3x256xf32>
      %c0_12 = arith.constant 0 : index
      %c0_13 = arith.constant 0 : index
      %21 = vector.load %arg4[%c0_12, %c0_13] : memref<1x256xf32, #tpu.memory_space<vmem>>, vector<1x256xf32>
      %22 = vector.broadcast %21 : vector<1x256xf32> to vector<3x256xf32>
      %23 = arith.mulf %20, %22 : vector<3x256xf32>
      %c0_14 = arith.constant 0 : index
      %c0_15 = arith.constant 0 : index
      %24 = vector.load %arg5[%c0_14, %c0_15] : memref<3x256xf32, #tpu.memory_space<vmem>>, vector<3x256xf32>
      tpu.vector_store %arg5[%c0_14, %c0_15], %23 {strides = array<i32>} : memref<3x256xf32, #tpu.memory_space<vmem>>, vector<3x256xf32>,
    } else {
    }
    return
  }
  func.func @transform_0(%arg0: i32, %arg1: i32) -> (i32, i32) {
    %c0_i32 = arith.constant 0 : i32
    %c0_i32_0 = arith.constant 0 : i32
    return %arg1, %c0_i32 : i32, i32
  }
  func.func @transform_1(%arg0: i32, %arg1: i32) -> (i32, i32) {
    %c0_i32 = arith.constant 0 : i32
    %c0_i32_0 = arith.constant 0 : i32
    return %c0_i32, %arg1 : i32, i32
  }
  func.func @transform_2(%arg0: i32, %arg1: i32) -> (i32, i32) {
    %c0_i32 = arith.constant 0 : i32
    %c0_i32_0 = arith.constant 0 : i32
    return %c0_i32, %arg0 : i32, i32
  }
  func.func @transform_3(%arg0: i32, %arg1: i32) -> (i32, i32) {
    %c0_i32 = arith.constant 0 : i32
    %c0_i32_0 = arith.constant 0 : i32
    return %c0_i32, %arg0 : i32, i32
  }
}

</mosaic_0001>

<bundles_post_ra>
// kernel: tpu_custom_call.1
= control target key start
LH: loop header
LB: loop body
LE: loop exit
PB: predicated region body
PF: predicated region fallthrough
CT: control target
= control target key end

     0   :  { %8 = vsyncpa [#allocation3], 0  ;;  %s2577_s0 = inlined_call_operand.vmem [shape: s32[512,1], index: 0, kind: input, shape index: {}]   ;;  %s2578_s1 = inlined_call_operand.vmem [shape: f32[3,512], index: 1, kind: input, shape index: {}]   ;;  %s2579_s2 = inlined_call_operand.vmem [shape: f32[1,512], index: 2, kind: input, shape index: {}]   ;;  %s2580_s3 = inlined_call_operand.hbm [shape: f32[3,512], index: 3, kind: output, shape index: {}]  }
   0x1   :  { %10 = vsyncpa [#allocation3 + $0x1], 0  ;;  %s1683_s12 = smov 0   ;;  %s1685_s13 = smov 0  }
   0x2   :  { %s1687_s14 = smov 0   ;;  %s1689_s15 = smov 0  }
   0x3   :  { %s1691_s16 = smov 0   ;;  %s1693_s17 = smov 0  }
   0x4 LB: > { %s1247_s18 = sadd.s32 4294967295, %s1658_s17   ;;  %s1248_s19 = sadd.s32 4294967294, %s1658_s17   ;;  %s1658_s17 = sphi %s1693_s17, %s16_s17   ;;  %s1654_s16 = sphi %s1691_s16, %s2587_s16   ;;  %s1650_s15 = sphi %s1689_s15, %s2586_s15   ;;  %s1646_s14 = sphi %s1687_s14, %s2585_s14   ;;  %s1642_s13 = sphi %s1685_s13, %s2584_s13   ;;  %s1638_s12 = sphi %s1683_s12, %s2583_s12  }
   0x5   : > { %s28_s20 = sadd.s32 1, %s1654_s16  ;;  %s113_s21 = sadd.s32 1, %s1646_s14 }
   0x6   : > { %p30_p0 = scmp.ge.s32.totalorder %s28_s20, 2  ;;  %p123_p1 = scmp.ne.s32.totalorder %s1646_s14, %s1642_s13 }
   0x7   : > { %p124_p2 = scmp.eq.s32.totalorder %s1247_s18, 1  ;;  %p129_p3 = scmp.ne.s32.totalorder %s1642_s13, %s1638_s12 }
   0x8   : > { %s2589_s20 = smov (%p30_p0, %s28_s20), 0  ;;  %p130_p5 = scmp.eq.s32.totalorder %s1248_s19, 1 }
   0x9   : > { %p1723_p4 = por %p124_p2, %p123_p1  ;;  %s110_s23 = ssub.s32 %s1654_s16, %s2589_s20 }
   0xa   : > { %p1253_p6 = scmp.ge.s32.totalorder %s1658_s17, 1  ;;  %p111_p7 = scmp.eq.s32.totalorder %s110_s23, 0 }
   0xb   : > { %p1730_p8 = por %p130_p5, %p129_p3  ;;  %p174_p9 = scmp.lt.s32.totalorder %s1658_s17, 3 }
   0xc   : > { %s1736_s25 = scalar_select %p111_p7, %s1646_s14, %s113_s21  }
   0xd   : > { %p175_p10 = pnand %p1253_p6, %p174_p9 }
   0xe   : > { %s1256_s26 = sshll.u32 (!%p175_p10), %s1650_s15, 8  ;;  %s204_s19 = sand.u32 (!%p175_p10), 1, %s1642_s13  }
   0xf   : > { %178 = sbr.rel (%p175_p10) target bundleno = 493 (0x1ed), region = 32  ;;  %s1254_s21 = sshll.u32 (!%p175_p10), %s204_s19, 3 }
  0x10   : > { %s2527_s23 = scalar_lea.vmem (!%p175_p10), [#allocation2], %s1254_s21  ;;  %s1518_s30 = sshll.u32 (!%p175_p10), %s1650_s15, 3 }
  0x11   : > { %s1148_s6 = scalar_lea.hbm (!%p175_p10), %s2580_s3, %s1518_s30  ;;  %s1150_s7 = sshll.u32 (!%p175_p10), %s2527_s23, 4  ;;  %s1151_s7 = int_to_ptr.vmem [resolvable:$true] %s1150_s7 }
  0x12   : > { %s1152_s8 = sshll.u32 (!%p175_p10), %s1148_s6, 4  ;;  %s1137_s9 = scalar_lea.sflag (!%p175_p10), [#allocation3], %s204_s19  ;;  %s1153_s8 = int_to_ptr.hbm [resolvable:$true] %s1152_s8 }
  0x13   : > { %s1594_s10 = sshra.s32 (!%p175_p10), %s1153_s8, 4  ;;  %s1600_s21 = scalar_lea.hbm (!%p175_p10), %s2580_s3, 16  ;;  %s1595_s10 = int_to_ptr.hbm [resolvable:$true] %s1594_s10 }
  0x14   : > { %v240_v0 = vld [vmem:[%s2577_s0 + $0x20] sm:$0xff]  ;;  %v238_v1 = vld [vmem:[%s2577_s0 + $0x10] sm:$0xff]  ;;  %v1660_v3 = vmov 0   ;;  %v1748_v4 = vstv %s1256_s26  ;;  %v241_v8 = vld [vmem:[%s2577_s0 + $0x28] sm:$0xff]  ;;  %s1255_s26 = sshll.u32 %s1650_s15, 1  ;;  %s1596_s15 = scalar_lea.hbm %s1595_s10, 8 }
  0x15   : > { %v236_v2 = vld [vmem:[%s2577_s0] sm:$0xff]  ;;  %1579 = vset.pattern.permute.xlu2 %v1660_v3  ;;  %1578 = vset.pattern.permute.xlu1 %v1660_v3  ;;  %v305_v5 = vsub.s32 %v240_v0, %v1748_v4  ;;  %v303_v6 = vsub.s32 %v238_v1, %v1748_v4  ;;  %v239_v9 = vld [vmem:[%s2577_s0 + $0x18] sm:$0xff]  ;;  %v237_v10 = vld [vmem:[%s2577_s0 + $0x8] sm:$0xff]  ;;  %v306_v11 = vsub.s32 %v241_v8, %v1748_v4  ;;  %p220_p11 = scmp.lt.s32.totalorder %s1255_s26, 3  ;;  %p1597_p12 = scmp.ne.s32.totalorder %s1595_s10, %s1596_s15 }
  0x16   : > { %1577 = vset.pattern.permute.xlu0 %v1660_v3  ;;  %v301_v7 = vsub.s32 %v236_v2, %v1748_v4  ;;  %v304_v12 = vsub.s32 %v239_v9, %v1748_v4  ;;  %v302_v13 = vsub.s32 %v237_v10, %v1748_v4  ;;  %v244_v14 = vld [vmem:[%s2577_s0 + $0x40] sm:$0xff]  ;;  %v243_v15 = vld [vmem:[%s2577_s0 + $0x38] sm:$0xff]  ;;  %v242_v16 = vld [vmem:[%s2577_s0 + $0x30] sm:$0xff]  ;;  %p1601_p1 = scmp.lt.s32.totalorder %s1595_s10, %s2580_s3  ;;  %p1602_p2 = scmp.lt.s32.totalorder %s1600_s21, %s1596_s15 }
  0x17   : > { %378 = vperm.xlu2 %1579, %v305_v5   ;;  %372 = vperm.xlu1 %1578, %v303_v6   ;;  %v309_v17 = vsub.s32 %v244_v14, %v1748_v4  ;;  %v308_v18 = vsub.s32 %v243_v15, %v1748_v4  ;;  %v307_v19 = vsub.s32 %v242_v16, %v1748_v4  ;;  %v247_v20 = vld [vmem:[%s2577_s0 + $0x58] sm:$0xff]  ;;  %v246_v21 = vld [vmem:[%s2577_s0 + $0x50] sm:$0xff]  ;;  %v245_v22 = vld [vmem:[%s2577_s0 + $0x48] sm:$0xff]  ;;  %s2591_s26 = smov (!%p220_p11, %s1255_s26), 3  ;;  %p1598_p13 = pnand %p1597_p12, %p1723_p4 }
  0x18   : > { %366 = vperm.xlu0 %1577, %v301_v7   ;;  %v312_v23 = vsub.s32 %v247_v20, %v1748_v4  ;;  %v311_v24 = vsub.s32 %v246_v21, %v1748_v4  ;;  %v310_v25 = vsub.s32 %v245_v22, %v1748_v4  ;;  %v250_v26 = vld [vmem:[%s2577_s0 + $0x70] sm:$0xff]  ;;  %v249_v27 = vld [vmem:[%s2577_s0 + $0x68] sm:$0xff]  ;;  %v248_v28 = vld [vmem:[%s2577_s0 + $0x60] sm:$0xff]  ;;  %s222_s29 = scalar_lea.vmem %s2579_s2, %s2591_s26  ;;  %p1603_p3 = por %p1602_p2, %p1601_p1 }
  0x19   : > { %v315_v29 = vsub.s32 %v250_v26, %v1748_v4  ;;  %v314_v30 = vsub.s32 %v249_v27, %v1748_v4  ;;  %v313_v31 = vsub.s32 %v248_v28, %v1748_v4  ;;  %v253_v32 = vld [vmem:[%s2577_s0 + $0x88] sm:$0xff]  ;;  %v252_v33 = vld [vmem:[%s2577_s0 + $0x80] sm:$0xff]  ;;  %v251_v34 = vld [vmem:[%s2577_s0 + $0x78] sm:$0xff]  ;;  %p1599_p0 = pneg %p1598_p13 }
  0x1a   : > { %v318_v35 = vsub.s32 %v253_v32, %v1748_v4  ;;  %v317_v36 = vsub.s32 %v252_v33, %v1748_v4  ;;  %v316_v37 = vsub.s32 %v251_v34, %v1748_v4  ;;  %v256_v38 = vld [vmem:[%s2577_s0 + $0xa0] sm:$0xff]  ;;  %v255_v39 = vld [vmem:[%s2577_s0 + $0x98] sm:$0xff]  ;;  %v254_v40 = vld [vmem:[%s2577_s0 + $0x90] sm:$0xff] }
  0x1b   : > { %v321_v41 = vsub.s32 %v256_v38, %v1748_v4  ;;  %v320_v42 = vsub.s32 %v255_v39, %v1748_v4  ;;  %v319_v43 = vsub.s32 %v254_v40, %v1748_v4  ;;  %v259_v44 = vld [vmem:[%s2577_s0 + $0xb8] sm:$0xff]  ;;  %v258_v45 = vld [vmem:[%s2577_s0 + $0xb0] sm:$0xff]  ;;  %v257_v46 = vld [vmem:[%s2577_s0 + $0xa8] sm:$0xff]  ;;  %p1604_p5 = pnand %p1603_p3, %p1599_p0 }
  0x1c   : > { %v324_v47 = vsub.s32 %v259_v44, %v1748_v4  ;;  %v323_v48 = vsub.s32 %v258_v45, %v1748_v4  ;;  %v322_v49 = vsub.s32 %v257_v46, %v1748_v4  ;;  %v283_v50 = vld [vmem:[%s2577_s0 + $0x178] sm:$0xff]  ;;  %v261_v51 = vld [vmem:[%s2577_s0 + $0xc8] sm:$0xff]  ;;  %v260_v52 = vld [vmem:[%s2577_s0 + $0xc0] sm:$0xff] }
  0x1d   : > { %v348_v53 = vsub.s32 %v283_v50, %v1748_v4  ;;  %v326_v54 = vsub.s32 %v261_v51, %v1748_v4  ;;  %v325_v55 = vsub.s32 %v260_v52, %v1748_v4  ;;  %v267_v56 = vld [vmem:[%s2577_s0 + $0xf8] sm:$0xff]  ;;  %v282_v58 = vld [vmem:[%s2577_s0 + $0x170] sm:$0xff]  ;;  %v281_v0 = vld [vmem:[%s2577_s0 + $0x168] sm:$0xff] }
  0x1e   : > { %v299_v57 = vld [vmem:[%s2577_s0 + $0x1f8] sm:$0xff]  ;;  %v332_v59 = vsub.s32 %v267_v56, %v1748_v4  ;;  %v347_v61 = vsub.s32 %v282_v58, %v1748_v4  ;;  %v266_v62 = vld [vmem:[%s2577_s0 + $0xf0] sm:$0xff]  ;;  %v346_v3 = vsub.s32 %v281_v0, %v1748_v4  ;;  %v265_v5 = vld [vmem:[%s2577_s0 + $0xe8] sm:$0xff] }
  0x1f   : > { %381 = vperm.xlu2 %1579, %v306_v11   ;;  %375 = vperm.xlu1 %1578, %v304_v12   ;;  %v364_v60 = vsub.s32 %v299_v57, %v1748_v4  ;;  %v298_v63 = vld [vmem:[%s2577_s0 + $0x1f0] sm:$0xff]  ;;  %v331_v1 = vsub.s32 %v266_v62, %v1748_v4  ;;  %v297_v6 = vld [vmem:[%s2577_s0 + $0x1e8] sm:$0xff]  ;;  %v280_v7 = vld [vmem:[%s2577_s0 + $0x160] sm:$0xff]  ;;  %v330_v8 = vsub.s32 %v265_v5, %v1748_v4 }
  0x20   : > { %369 = vperm.xlu0 %1577, %v302_v13   ;;  %v363_v2 = vsub.s32 %v298_v63, %v1748_v4  ;;  %v362_v9 = vsub.s32 %v297_v6, %v1748_v4  ;;  %v345_v10 = vsub.s32 %v280_v7, %v1748_v4  ;;  %v264_v11 = vld [vmem:[%s2577_s0 + $0xe0] sm:$0xff]  ;;  %v279_v14 = vld [vmem:[%s2577_s0 + $0x158] sm:$0xff]  ;;  %v278_v21 = vld [vmem:[%s2577_s0 + $0x150] sm:$0xff] }
  0x21   : > { %v296_v12 = vld [vmem:[%s2577_s0 + $0x1e0] sm:$0xff]  ;;  %v329_v15 = vsub.s32 %v264_v11, %v1748_v4  ;;  %v294_v26 = vld [vmem:[%s2577_s0 + $0x1d0] sm:$0xff]  ;;  %v277_v28 = vld [vmem:[%s2577_s0 + $0x148] sm:$0xff] }
  0x22   : > { %v361_v16 = vsub.s32 %v296_v12, %v1748_v4  ;;  %v275_v32 = vld [vmem:[%s2577_s0 + $0x138] sm:$0xff]  ;;  %v293_v33 = vld [vmem:[%s2577_s0 + $0x1c8] sm:$0xff]  ;;  %v292_v45 = vld [vmem:[%s2577_s0 + $0x1c0] sm:$0xff] }
  0x23   : > { %v340_v38 = vsub.s32 %v275_v32, %v1748_v4  ;;  %v358_v39 = vsub.s32 %v293_v33, %v1748_v4  ;;  %v272_v50 = vld [vmem:[%s2577_s0 + $0x120] sm:$0xff]  ;;  %v290_v51 = vld [vmem:[%s2577_s0 + $0x1b0] sm:$0xff]  ;;  %v289_v63 = vld [vmem:[%s2577_s0 + $0x1a8] sm:$0xff] }
  0x24   : > { %v337_v56 = vsub.s32 %v272_v50, %v1748_v4  ;;  %v355_v57 = vsub.s32 %v290_v51, %v1748_v4  ;;  %v269_v5 = vld [vmem:[%s2577_s0 + $0x108] sm:$0xff]  ;;  %v287_v6 = vld [vmem:[%s2577_s0 + $0x198] sm:$0xff] }
  0x25   : > { %v334_v11 = vsub.s32 %v269_v5, %v1748_v4  ;;  %v352_v12 = vsub.s32 %v287_v6, %v1748_v4  ;;  %v230_v5 = vld [vmem:[%s2578_s1] sm:$0x77] }
  0x26   : > { %944 = vst [vmem:[#allocation1] ss:$2 sm:$0xff] %v230_v5 }
  0x27   : > { %390 = vperm.xlu2 %1579, %v309_v17   ;;  %387 = vperm.xlu1 %1578, %v308_v18   ;;  %v344_v17 = vsub.s32 %v279_v14, %v1748_v4  ;;  %v263_v18 = vld [vmem:[%s2577_s0 + $0xd8] sm:$0xff] }
  0x28   : > { %384 = vperm.xlu0 %1577, %v307_v19   ;;  %v295_v19 = vld [vmem:[%s2577_s0 + $0x1d8] sm:$0xff]  ;;  %v328_v22 = vsub.s32 %v263_v18, %v1748_v4  ;;  %v268_v18 = vld [vmem:[%s2577_s0 + $0x100] sm:$0xff] }
  0x2f   : > { %399 = vperm.xlu2 %1579, %v312_v23   ;;  %396 = vperm.xlu1 %1578, %v311_v24   ;;  %v360_v23 = vsub.s32 %v295_v19, %v1748_v4  ;;  %v343_v24 = vsub.s32 %v278_v21, %v1748_v4 }
  0x30   : > { %393 = vperm.xlu0 %1577, %v310_v25   ;;  %v262_v25 = vld [vmem:[%s2577_s0 + $0xd0] sm:$0xff] }
  0x37   : > { %408 = vperm.xlu2 %1579, %v315_v29   ;;  %405 = vperm.xlu1 %1578, %v314_v30   ;;  %v327_v29 = vsub.s32 %v262_v25, %v1748_v4  ;;  %v359_v30 = vsub.s32 %v294_v26, %v1748_v4  ;;  %v333_v26 = vsub.s32 %v268_v18, %v1748_v4 }
  0x38   : > { %402 = vperm.xlu0 %1577, %v313_v31   ;;  %v342_v31 = vsub.s32 %v277_v28, %v1748_v4 }
  0x3f   : > { %417 = vperm.xlu2 %1579, %v318_v35   ;;  %414 = vperm.xlu1 %1578, %v317_v36   ;;  %v276_v36 = vld [vmem:[%s2577_s0 + $0x140] sm:$0xff] }
  0x40   : > { %411 = vperm.xlu0 %1577, %v316_v37   ;;  %v341_v40 = vsub.s32 %v276_v36, %v1748_v4 }
  0x47   : > { %426 = vperm.xlu2 %1579, %v321_v41   ;;  %423 = vperm.xlu1 %1578, %v320_v42   ;;  %v291_v41 = vld [vmem:[%s2577_s0 + $0x1b8] sm:$0xff]  ;;  %v274_v42 = vld [vmem:[%s2577_s0 + $0x130] sm:$0xff] }
  0x48   : > { %420 = vperm.xlu0 %1577, %v319_v43  }
  0x4f   : > { %435 = vperm.xlu2 %1579, %v324_v47   ;;  %432 = vperm.xlu1 %1578, %v323_v48   ;;  %v356_v47 = vsub.s32 %v291_v41, %v1748_v4  ;;  %v339_v48 = vsub.s32 %v274_v42, %v1748_v4 }
  0x50   : > { %429 = vperm.xlu0 %1577, %v322_v49   ;;  %v357_v49 = vsub.s32 %v292_v45, %v1748_v4 }
  0x57   : > { %507 = vperm.xlu2 %1579, %v348_v53   ;;  %441 = vperm.xlu1 %1578, %v326_v54   ;;  %v273_v54 = vld [vmem:[%s2577_s0 + $0x128] sm:$0xff] }
  0x58   : > { %438 = vperm.xlu0 %1577, %v325_v55   ;;  %v338_v58 = vsub.s32 %v273_v54, %v1748_v4 }
  0x5f   : > { %459 = vperm.xlu2 %1579, %v332_v59   ;;  %555 = vperm.xlu1 %1578, %v364_v60   ;;  %v288_v59 = vld [vmem:[%s2577_s0 + $0x1a0] sm:$0xff]  ;;  %v271_v60 = vld [vmem:[%s2577_s0 + $0x118] sm:$0xff] }
  0x60   : > { %504 = vperm.xlu0 %1577, %v347_v61  }
  0x67   : > { %456 = vperm.xlu2 %1579, %v331_v1   ;;  %552 = vperm.xlu1 %1578, %v363_v2   ;;  %v353_v1 = vsub.s32 %v288_v59, %v1748_v4  ;;  %v336_v2 = vsub.s32 %v271_v60, %v1748_v4 }
  0x68   : > { %501 = vperm.xlu0 %1577, %v346_v3   ;;  %v354_v3 = vsub.s32 %v289_v63, %v1748_v4 }
  0x6f   : > { %453 = vperm.xlu2 %1579, %v330_v8   ;;  %549 = vperm.xlu1 %1578, %v362_v9   ;;  %v270_v9 = vld [vmem:[%s2577_s0 + $0x110] sm:$0xff] }
  0x70   : > { %498 = vperm.xlu0 %1577, %v345_v10   ;;  %v335_v14 = vsub.s32 %v270_v9, %v1748_v4 }
  0x71   : > { %v1891_v13 = vpop.permute.xlu2 %378 }
  0x77   : > { %450 = vperm.xlu2 %1579, %v329_v15   ;;  %546 = vperm.xlu1 %1578, %v361_v16   ;;  %v233_v15 = vlaneseq }
  0x78   : > { %495 = vperm.xlu0 %1577, %v344_v17   ;;  %v285_v17 = vld [vmem:[%s2577_s0 + $0x188] sm:$0xff] }
  0x79   : > { %v1905_v20 = vpop.permute.xlu2 %381  ;;  %v2017_v16 = vand.u32 127, %v233_v15  ;;  %v350_v25 = vsub.s32 %v285_v17, %v1748_v4  ;;  %v1662_v15 = vmov 0.0  }
  0x7a   : > { %229 = vst [vmem:[%s2527_s23] sm:$0x77] %v1662_v15 }
  0x7b   : > { %vm567_vm13 = vcmp.eq.s32.totalorder %v2017_v16, %v1905_v20  ;;  %vm565_vm14 = vcmp.eq.s32.totalorder %v2017_v16, %v1891_v13  ;;  %v2117_v42 = vadd.s32 128, %v2017_v16 }
  0x7f   : > { %447 = vperm.xlu2 %1579, %v328_v22   ;;  %543 = vperm.xlu1 %1578, %v360_v23   ;;  %v286_v22 = vld [vmem:[%s2577_s0 + $0x190] sm:$0xff] }
  0x80   : > { %492 = vperm.xlu0 %1577, %v343_v24   ;;  %v1661_v24 = vmov 1.0   ;;  %v351_v28 = vsub.s32 %v286_v22, %v1748_v4 }
  0x81   : > { %v1919_v27 = vpop.permute.xlu2 %390 }
  0x82   : > { %vm573_vm9 = vcmp.eq.s32.totalorder %v2017_v16, %v1919_v27 }
  0x87   : > { %444 = vperm.xlu2 %1579, %v327_v29   ;;  %540 = vperm.xlu1 %1578, %v359_v30  }
  0x88   : > { %489 = vperm.xlu0 %1577, %v342_v31   ;;  %v284_v31 = vld [vmem:[%s2577_s0 + $0x180] sm:$0xff] }
  0x89   : > { %v1933_v34 = vpop.permute.xlu2 %399  ;;  %v1935_v35 = vpop.permute.xlu1 %372  ;;  %v349_v33 = vsub.s32 %v284_v31, %v1748_v4  ;;  %v1127_v31 = vld [vmem:[%s222_s29] sm:$0x3] }
  0x8a   : > { %v1940_v37 = vpop.permute.xlu0 %366  ;;  %vm579_vm6 = vcmp.eq.s32.totalorder %v2017_v16, %v1933_v34 }
  0x8f   : > { %483 = vperm.xlu2 %1579, %v340_v38   ;;  %537 = vperm.xlu1 %1578, %v358_v39  }
  0x90   : > { %486 = vperm.xlu0 %1577, %v341_v40  }
  0x91   : > { %v1951_v43 = vpop.permute.xlu2 %408  ;;  %v1953_v44 = vpop.permute.xlu1 %375 }
  0x92   : > { %v1958_v46 = vpop.permute.xlu0 %369  ;;  %vm585_vm2 = vcmp.eq.s32.totalorder %v2017_v16, %v1951_v43 }
  0x97   : > { %531 = vperm.xlu2 %1579, %v356_v47   ;;  %480 = vperm.xlu1 %1578, %v339_v48  }
  0x98   : > { %534 = vperm.xlu0 %1577, %v357_v49  }
  0x99   : > { %v1969_v52 = vpop.permute.xlu2 %417  ;;  %v1971_v53 = vpop.permute.xlu1 %387 }
  0x9a   : > { %v1976_v55 = vpop.permute.xlu0 %384  ;;  %vm571_vm11 = vcmp.eq.s32.totalorder %v2017_v16, %v1971_v53 }
  0x9b   : > { %vm569_vm12 = vcmp.eq.s32.totalorder %v2017_v16, %v1976_v55 }
  0x9f   : > { %474 = vperm.xlu2 %1579, %v337_v56   ;;  %528 = vperm.xlu1 %1578, %v355_v57  }
  0xa0   : > { %477 = vperm.xlu0 %1577, %v338_v58  }
  0xa1   : > { %v1987_v61 = vpop.permute.xlu2 %426  ;;  %v1989_v62 = vpop.permute.xlu1 %396 }
  0xa2   : > { %v1994_v0 = vpop.permute.xlu0 %393  ;;  %vm577_vm7 = vcmp.eq.s32.totalorder %v2017_v16, %v1989_v62 }
  0xa3   : > { %vm575_vm8 = vcmp.eq.s32.totalorder %v2017_v16, %v1994_v0 }
  0xa7   : > { %522 = vperm.xlu2 %1579, %v353_v1   ;;  %471 = vperm.xlu1 %1578, %v336_v2   ;;  %v231_v2 = vld [vmem:[%s2578_s1 + $0x8] sm:$0x77] }
  0xa8   : > { %525 = vperm.xlu0 %1577, %v354_v3   ;;  %946 = vst [vmem:[#allocation1 + $0x10] ss:$2 sm:$0xff] %v231_v2 }
  0xa9   : > { %v2005_v7 = vpop.permute.xlu2 %435  ;;  %v2007_v8 = vpop.permute.xlu1 %405 }
  0xaa   : > { %v2012_v10 = vpop.permute.xlu0 %402  ;;  %vm583_vm3 = vcmp.eq.s32.totalorder %v2017_v16, %v2007_v8 }
  0xab   : > { %vm581_vm4 = vcmp.eq.s32.totalorder %v2017_v16, %v2012_v10 }
  0xaf   : > { %465 = vperm.xlu2 %1579, %v334_v11   ;;  %519 = vperm.xlu1 %1578, %v352_v12   ;;  %v2412_v9 = vld.sshfl [vmem:[#allocation1 + $0x10] sm:$0xff pattern:$0x75316420]  ;;  %v948_v11 = vld.sshfl [vmem:[#allocation1 + $0x8] sm:$0xff pattern:$0x75316420] }
  0xb0   : > { %468 = vperm.xlu0 %1577, %v335_v14   ;;  %v950_v14 = vld.sshfl [vmem:[#allocation1 + $0x18] sm:$0xff pattern:$0x75316420] }
  0xb1   : > { %v2025_v19 = vpop.permute.xlu2 %507  ;;  %v2027_v21 = vpop.permute.xlu1 %414 }
  0xb2   : > { %v2032_v23 = vpop.permute.xlu0 %411  ;;  %vm651_vm0 = vcmp.eq.s32.totalorder %v2017_v16, %v2025_v19 }
  0xb3   : > { %vm587_vm1 = vcmp.eq.s32.totalorder %v2017_v16, %v2032_v23  ;;  %1417 = vmatpush.msk.msra.mxu2 %vm651_vm0, %v1661_v24  ;;  %vm563_vm0 = vcmp.eq.s32.totalorder %v2017_v16, %v1953_v44 }
  0xb4   : > { %1385 = vmatpush.msk.msra.mxu0 %vm587_vm1, %v1661_v24  ;;  %vm561_vm1 = vcmp.eq.s32.totalorder %v2017_v16, %v1935_v35 }
  0xb6   : > { %1386 = vmatpush.msk.msra.mxu0 %vm585_vm2, %v1661_v24  ;;  %vm559_vm2 = vcmp.eq.s32.totalorder %v2017_v16, %v1958_v46 }
  0xb7   : > { %513 = vperm.xlu2 %1579, %v350_v25   ;;  %462 = vperm.xlu1 %1578, %v333_v26  }
  0xb8   : > { %516 = vperm.xlu0 %1577, %v351_v28   ;;  %1387 = vmatpush.msk.msra.mxu0 %vm583_vm3, %v1661_v24  ;;  %vm557_vm3 = vcmp.eq.s32.totalorder %v2017_v16, %v1940_v37 }
  0xb9   : > { %v2049_v29 = vpop.permute.xlu2 %459  ;;  %v2051_v30 = vpop.permute.xlu1 %423 }
  0xba   : > { %1388 = vmatpush.msk.msra.mxu0 %vm581_vm4, %v1661_v24  ;;  %v2059_v32 = vpop.permute.xlu0 %420  ;;  %vm619_vm5 = vcmp.eq.s32.totalorder %v2017_v16, %v2049_v29  ;;  %vm588_vm4 = vcmp.eq.s32.totalorder %v2117_v42, %v2032_v23 }
  0xbb   : > { %1401 = vmatpush.msk.msra.mxu1 %vm619_vm5, %v1661_v24 }
  0xbc   : > { %1389 = vmatpush.msk.msra.mxu0 %vm579_vm6, %v1661_v24 }
  0xbe   : > { %1390 = vmatpush.msk.msra.mxu0 %vm577_vm7, %v1661_v24 }
  0xc0   : > { %510 = vperm.xlu0 %1577, %v349_v33   ;;  %1391 = vmatpush.msk.msra.mxu0 %vm575_vm8, %v1661_v24  ;;  %vm586_vm8 = vcmp.eq.s32.totalorder %v2117_v42, %v1951_v43 }
  0xc1   : > { %v2074_v36 = vpop.permute.xlu2 %456  ;;  %v2076_v38 = vpop.permute.xlu1 %432 }
  0xc2   : > { %1392 = vmatpush.msk.msra.mxu0 %vm573_vm9, %v1661_v24  ;;  %v2081_v4 = vpop.permute.xlu0 %429  ;;  %vm617_vm10 = vcmp.eq.s32.totalorder %v2017_v16, %v2074_v36  ;;  %vm584_vm9 = vcmp.eq.s32.totalorder %v2117_v42, %v2007_v8 }
  0xc3   : > { %1402 = vmatpush.msk.msra.mxu1 %vm617_vm10, %v1661_v24  ;;  %vm582_vm10 = vcmp.eq.s32.totalorder %v2117_v42, %v2012_v10  ;;  %v947_v10 = vld.sshfl [vmem:[#allocation1] sm:$0xff pattern:$0x75316420] }
  0xc4   : > { %1393 = vmatpush.msk.msra.mxu0 %vm571_vm11, %v1661_v24  ;;  %vm580_vm11 = vcmp.eq.s32.totalorder %v2117_v42, %v1933_v34 }
  0xc6   : > { %1394 = vmatpush.msk.msra.mxu0 %vm569_vm12, %v1661_v24 }
  0xc8   : > { %1395 = vmatpush.msk.msra.mxu0 %vm567_vm13, %v1661_v24 }
  0xc9   : > { %v2095_v39 = vpop.permute.xlu2 %453  ;;  %v2097_v40 = vpop.permute.xlu1 %441 }
  0xca   : > { %1396 = vmatpush.msk.msra.mxu0 %vm565_vm14, %v1661_v24  ;;  %v2102_v41 = vpop.permute.xlu0 %438  ;;  %vm615_vm15 = vcmp.eq.s32.totalorder %v2017_v16, %v2095_v39 }
  0xcb   : > { %1403 = vmatpush.msk.msra.mxu1 %vm615_vm15, %v1661_v24  ;;  %vm578_vm15 = vcmp.eq.s32.totalorder %v2117_v42, %v1989_v62 }
  0xcc   : > { %1397 = vmatpush.msk.msra.mxu0 %vm563_vm0, %v1661_v24  ;;  %vm576_vm0 = vcmp.eq.s32.totalorder %v2117_v42, %v1994_v0 }
  0xce   : > { %1398 = vmatpush.msk.msra.mxu0 %vm561_vm1, %v1661_v24  ;;  %vm574_vm1 = vcmp.eq.s32.totalorder %v2117_v42, %v1919_v27 }
  0xd0   : > { %1399 = vmatpush.msk.msra.mxu0 %vm559_vm2, %v1661_v24  ;;  %vm572_vm2 = vcmp.eq.s32.totalorder %v2117_v42, %v1971_v53 }
  0xd1   : > { %v2119_v45 = vpop.permute.xlu2 %450  ;;  %v2121_v47 = vpop.permute.xlu1 %555 }
  0xd2   : > { %1400 = vmatpush.msk.msra.mxu0 %vm557_vm3, %v1661_v24  ;;  %v2126_v48 = vpop.permute.xlu0 %504  ;;  %vm613_vm5 = vcmp.eq.s32.totalorder %v2017_v16, %v2119_v45  ;;  %vm683_vm6 = vcmp.eq.s32.totalorder %v2017_v16, %v2121_v47 }
  0xd3   : > { %1404 = vmatpush.msk.msra.mxu1 %vm613_vm5, %v1661_v24  ;;  %vm649_vm7 = vcmp.eq.s32.totalorder %v2017_v16, %v2126_v48  ;;  %1433 = vmatpush.msk.msra.mxu3 %vm683_vm6, %v1661_v24  ;;  %vm570_vm6 = vcmp.eq.s32.totalorder %v2117_v42, %v1976_v55 }
  0xd4   : > { %1449 = vmatpush.msk.msrb.mxu0 %vm588_vm4, %v1661_v24  ;;  %1418 = vmatpush.msk.msra.mxu2 %vm649_vm7, %v1661_v24  ;;  %vm607_vm7 = vcmp.eq.s32.totalorder %v2017_v16, %v2097_v40 }
  0xd5   : > { %971 = vmatmul.f32.vlgmr.msra.gmra.mxu0 %v947_v10 }
  0xd6   : > { %1450 = vmatpush.msk.msrb.mxu0 %vm586_vm8, %v1661_v24  ;;  %vm568_vm8 = vcmp.eq.s32.totalorder %v2117_v42, %v1905_v20 }
  0xd8   : > { %1451 = vmatpush.msk.msrb.mxu0 %vm584_vm9, %v1661_v24  ;;  %vm605_vm9 = vcmp.eq.s32.totalorder %v2017_v16, %v2102_v41 }
  0xd9   : > { %v2149_v49 = vpop.permute.xlu2 %447  ;;  %v2151_v50 = vpop.permute.xlu1 %552 }
  0xda   : > { %1452 = vmatpush.msk.msrb.mxu0 %vm582_vm10, %v1661_v24  ;;  %v2153_v51 = vpop.permute.xlu0 %501  ;;  %vm611_vm12 = vcmp.eq.s32.totalorder %v2017_v16, %v2149_v49  ;;  %vm681_vm13 = vcmp.eq.s32.totalorder %v2017_v16, %v2151_v50  ;;  %vm566_vm10 = vcmp.eq.s32.totalorder %v2117_v42, %v1891_v13 }
  0xdb   : > { %1405 = vmatpush.msk.msra.mxu1 %vm611_vm12, %v1661_v24  ;;  %vm647_vm14 = vcmp.eq.s32.totalorder %v2017_v16, %v2153_v51  ;;  %1434 = vmatpush.msk.msra.mxu3 %vm681_vm13, %v1661_v24  ;;  %vm564_vm12 = vcmp.eq.s32.totalorder %v2117_v42, %v1953_v44  ;;  %vm601_vm13 = vcmp.eq.s32.totalorder %v2017_v16, %v2076_v38 }
  0xdc   : > { %1453 = vmatpush.msk.msrb.mxu0 %vm580_vm11, %v1661_v24  ;;  %1419 = vmatpush.msk.msra.mxu2 %vm647_vm14, %v1661_v24  ;;  %vm603_vm11 = vcmp.eq.s32.totalorder %v2017_v16, %v2005_v7 }
  0xde   : > { %1454 = vmatpush.msk.msrb.mxu0 %vm578_vm15, %v1661_v24 }
  0xe0   : > { %1455 = vmatpush.msk.msrb.mxu0 %vm576_vm0, %v1661_v24  ;;  %vm562_vm0 = vcmp.eq.s32.totalorder %v2117_v42, %v1935_v35 }
  0xe1   : > { %v2176_v34 = vpop.permute.xlu2 %444  ;;  %v2178_v43 = vpop.permute.xlu1 %549 }
  0xe2   : > { %1456 = vmatpush.msk.msrb.mxu0 %vm574_vm1, %v1661_v24  ;;  %v2180_v54 = vpop.permute.xlu0 %498  ;;  %vm609_vm3 = vcmp.eq.s32.totalorder %v2017_v16, %v2176_v34  ;;  %vm679_vm4 = vcmp.eq.s32.totalorder %v2017_v16, %v2178_v43  ;;  %vm599_vm1 = vcmp.eq.s32.totalorder %v2017_v16, %v2081_v4 }
  0xe3   : > { %1406 = vmatpush.msk.msra.mxu1 %vm609_vm3, %v1661_v24  ;;  %vm645_vm5 = vcmp.eq.s32.totalorder %v2017_v16, %v2180_v54  ;;  %1435 = vmatpush.msk.msra.mxu3 %vm679_vm4, %v1661_v24  ;;  %vm597_vm3 = vcmp.eq.s32.totalorder %v2017_v16, %v1987_v61  ;;  %vm558_vm4 = vcmp.eq.s32.totalorder %v2117_v42, %v1940_v37 }
  0xe4   : > { %1457 = vmatpush.msk.msrb.mxu0 %vm572_vm2, %v1661_v24  ;;  %1420 = vmatpush.msk.msra.mxu2 %vm645_vm5, %v1661_v24  ;;  %vm560_vm2 = vcmp.eq.s32.totalorder %v2117_v42, %v1958_v46  ;;  %vm595_vm5 = vcmp.eq.s32.totalorder %v2017_v16, %v2051_v30 }
  0xe5   : > { %1407 = vmatpush.msk.msra.mxu1 %vm607_vm7, %v1661_v24 }
  0xe6   : > { %1458 = vmatpush.msk.msrb.mxu0 %vm570_vm6, %v1661_v24  ;;  %vm593_vm6 = vcmp.eq.s32.totalorder %v2017_v16, %v2059_v32 }
  0xe7   : > { %1408 = vmatpush.msk.msra.mxu1 %vm605_vm9, %v1661_v24  ;;  %vm591_vm9 = vcmp.eq.s32.totalorder %v2017_v16, %v1969_v52 }
  0xe8   : > { %1459 = vmatpush.msk.msrb.mxu0 %vm568_vm8, %v1661_v24 }
  0xe9   : > { %v2211_v27 = vpop.permute.xlu1 %546  ;;  %1409 = vmatpush.msk.msra.mxu1 %vm603_vm11, %v1661_v24  ;;  %vm620_vm11 = vcmp.eq.s32.totalorder %v2117_v42, %v2049_v29  ;;  %v2267_v37 = vpop.permute.xlu2 %483 }
  0xea   : > { %1460 = vmatpush.msk.msrb.mxu0 %vm566_vm10, %v1661_v24  ;;  %v2214_v20 = vpop.permute.xlu0 %495  ;;  %vm677_vm14 = vcmp.eq.s32.totalorder %v2017_v16, %v2211_v27  ;;  %vm589_vm10 = vcmp.eq.s32.totalorder %v2017_v16, %v2027_v21 }
  0xeb   : > { %1410 = vmatpush.msk.msra.mxu1 %vm601_vm13, %v1661_v24  ;;  %vm643_vm15 = vcmp.eq.s32.totalorder %v2017_v16, %v2214_v20  ;;  %1436 = vmatpush.msk.msra.mxu3 %vm677_vm14, %v1661_v24 }
  0xec   : > { %1461 = vmatpush.msk.msrb.mxu0 %vm564_vm12, %v1661_v24  ;;  %1421 = vmatpush.msk.msra.mxu2 %vm643_vm15, %v1661_v24  ;;  %vm618_vm12 = vcmp.eq.s32.totalorder %v2117_v42, %v2074_v36  ;;  %vm616_vm15 = vcmp.eq.s32.totalorder %v2117_v42, %v2095_v39  ;;  %v941_v36 = vld [vmem:[%s2527_s23] sm:$0x77] }
  0xed   : > { %1411 = vmatpush.msk.msra.mxu1 %vm599_vm1, %v1661_v24  ;;  %vm612_vm1 = vcmp.eq.s32.totalorder %v2117_v42, %v2149_v49 }
  0xee   : > { %1462 = vmatpush.msk.msrb.mxu0 %vm562_vm0, %v1661_v24  ;;  %vm614_vm0 = vcmp.eq.s32.totalorder %v2117_v42, %v2119_v45 }
  0xef   : > { %1412 = vmatpush.msk.msra.mxu1 %vm597_vm3, %v1661_v24 }
  0xf0   : > { %1463 = vmatpush.msk.msrb.mxu0 %vm560_vm2, %v1661_v24  ;;  %vm610_vm2 = vcmp.eq.s32.totalorder %v2117_v42, %v2176_v34 }
  0xf1   : > { %v2245_v13 = vpop.permute.xlu1 %543  ;;  %1413 = vmatpush.msk.msra.mxu1 %vm595_vm5, %v1661_v24  ;;  %v2296_v55 = vpop.permute.xlu2 %531  ;;  %vm608_vm5 = vcmp.eq.s32.totalorder %v2117_v42, %v2097_v40  ;;  %v1129_v40 = vperm.slane %v1127_v31, 0 }
  0xf2   : > { %1464 = vmatpush.msk.msrb.mxu0 %vm558_vm4, %v1661_v24  ;;  %v2248_v35 = vpop.permute.xlu0 %492  ;;  %vm675_vm7 = vcmp.eq.s32.totalorder %v2017_v16, %v2245_v13 }
  0xf3   : > { %1414 = vmatpush.msk.msra.mxu1 %vm593_vm6, %v1661_v24  ;;  %vm641_vm8 = vcmp.eq.s32.totalorder %v2017_v16, %v2248_v35  ;;  %1437 = vmatpush.msk.msra.mxu3 %vm675_vm7, %v1661_v24  ;;  %vm635_vm6 = vcmp.eq.s32.totalorder %v2017_v16, %v2267_v37  ;;  %vm606_vm7 = vcmp.eq.s32.totalorder %v2117_v42, %v2102_v41 }
  0xf4   : > { %1422 = vmatpush.msk.msra.mxu2 %vm641_vm8, %v1661_v24  ;;  %vm604_vm8 = vcmp.eq.s32.totalorder %v2117_v42, %v2005_v7  ;;  %1051 = vmatmul.f32.vlgmr.msrb.gmra.mxu0 %v947_v10 }
  0xf5   : > { %1415 = vmatpush.msk.msra.mxu1 %vm591_vm9, %v1661_v24  ;;  %vm602_vm9 = vcmp.eq.s32.totalorder %v2117_v42, %v2076_v38 }
  0xf7   : > { %1416 = vmatpush.msk.msra.mxu1 %vm589_vm10, %v1661_v24 }
  0xf8   : > { %991 = vmatmul.f32.vlgmr.msra.gmra.mxu1 %v948_v11 }
  0xf9   : > { %1465 = vmatpush.msk.msrb.mxu1 %vm620_vm11, %v1661_v24  ;;  %v2270_v44 = vpop.permute.xlu1 %540  ;;  %v2333_v59 = vpop.permute.xlu2 %474 }
  0xfa   : > { %v2274_v46 = vpop.permute.xlu0 %489  ;;  %vm673_vm13 = vcmp.eq.s32.totalorder %v2017_v16, %v2270_v44 }
  0xfb   : > { %1466 = vmatpush.msk.msrb.mxu1 %vm618_vm12, %v1661_v24  ;;  %vm639_vm14 = vcmp.eq.s32.totalorder %v2017_v16, %v2274_v46  ;;  %1438 = vmatpush.msk.msra.mxu3 %vm673_vm13, %v1661_v24  ;;  %vm600_vm12 = vcmp.eq.s32.totalorder %v2117_v42, %v2081_v4  ;;  %vm667_vm13 = vcmp.eq.s32.totalorder %v2017_v16, %v2296_v55  ;;  %v1130_v4 = vperm.slane %v1127_v31, 1 }
  0xfc   : > { %1423 = vmatpush.msk.msra.mxu2 %vm639_vm14, %v1661_v24  ;;  %vm598_vm14 = vcmp.eq.s32.totalorder %v2117_v42, %v1987_v61 }
  0xfd   : > { %1467 = vmatpush.msk.msrb.mxu1 %vm616_vm15, %v1661_v24  ;;  %vm596_vm15 = vcmp.eq.s32.totalorder %v2117_v42, %v2051_v30  ;;  %v1131_v41 = vrot.slane %v1130_v4, 4 }
  0xff   : > { %1468 = vmatpush.msk.msrb.mxu1 %vm614_vm0, %v1661_v24  ;;  %vm594_vm0 = vcmp.eq.s32.totalorder %v2117_v42, %v2059_v32 }
 0x101   : > { %1469 = vmatpush.msk.msrb.mxu1 %vm612_vm1, %v1661_v24  ;;  %v2292_v53 = vpop.permute.xlu1 %537  ;;  %v2366_v61 = vpop.permute.xlu2 %522 }
 0x102   : > { %v2298_v56 = vpop.permute.xlu0 %486  ;;  %vm671_vm3 = vcmp.eq.s32.totalorder %v2017_v16, %v2292_v53 }
 0x103   : > { %1470 = vmatpush.msk.msrb.mxu1 %vm610_vm2, %v1661_v24  ;;  %vm637_vm4 = vcmp.eq.s32.totalorder %v2017_v16, %v2298_v56  ;;  %1439 = vmatpush.msk.msra.mxu3 %vm671_vm3, %v1661_v24  ;;  %vm592_vm3 = vcmp.eq.s32.totalorder %v2117_v42, %v1969_v52 }
 0x104   : > { %1424 = vmatpush.msk.msra.mxu2 %vm637_vm4, %v1661_v24  ;;  %vm629_vm4 = vcmp.eq.s32.totalorder %v2017_v16, %v2333_v59 }
 0x105   : > { %1471 = vmatpush.msk.msrb.mxu1 %vm608_vm5, %v1661_v24  ;;  %vm590_vm5 = vcmp.eq.s32.totalorder %v2117_v42, %v2027_v21 }
 0x106   : > { %1425 = vmatpush.msk.msra.mxu2 %vm635_vm6, %v1661_v24 }
 0x107   : > { %1472 = vmatpush.msk.msrb.mxu1 %vm606_vm7, %v1661_v24 }
 0x109   : > { %1473 = vmatpush.msk.msrb.mxu1 %vm604_vm8, %v1661_v24  ;;  %v2319_v57 = vpop.permute.xlu1 %480  ;;  %vm661_vm8 = vcmp.eq.s32.totalorder %v2017_v16, %v2366_v61  ;;  %v2383_v52 = vpop.permute.xlu2 %465 }
 0x10a   : > { %v2323_v58 = vpop.permute.xlu0 %534  ;;  %vm633_vm10 = vcmp.eq.s32.totalorder %v2017_v16, %v2319_v57 }
 0x10b   : > { %1474 = vmatpush.msk.msrb.mxu1 %vm602_vm9, %v1661_v24  ;;  %1426 = vmatpush.msk.msra.mxu2 %vm633_vm10, %v1661_v24  ;;  %vm669_vm11 = vcmp.eq.s32.totalorder %v2017_v16, %v2323_v58 }
 0x10c   : > { %1440 = vmatpush.msk.msra.mxu3 %vm669_vm11, %v1661_v24  ;;  %vm623_vm11 = vcmp.eq.s32.totalorder %v2017_v16, %v2383_v52 }
 0x10d   : > { %1475 = vmatpush.msk.msrb.mxu1 %vm600_vm12, %v1661_v24 }
 0x10e   : > { %1441 = vmatpush.msk.msra.mxu3 %vm667_vm13, %v1661_v24 }
 0x10f   : > { %1476 = vmatpush.msk.msrb.mxu1 %vm598_vm14, %v1661_v24  ;;  %vm652_vm14 = vcmp.eq.s32.totalorder %v2117_v42, %v2025_v19 }
 0x111   : > { %1477 = vmatpush.msk.msrb.mxu1 %vm596_vm15, %v1661_v24  ;;  %v2346_v60 = vpop.permute.xlu1 %528  ;;  %v2406_v7 = vpop.permute.xlu2 %513 }
 0x112   : > { %v2350_v62 = vpop.permute.xlu0 %477  ;;  %vm665_vm1 = vcmp.eq.s32.totalorder %v2017_v16, %v2346_v60  ;;  %vm655_vm15 = vcmp.eq.s32.totalorder %v2017_v16, %v2406_v7 }
 0x113   : > { %1478 = vmatpush.msk.msrb.mxu1 %vm594_vm0, %v1661_v24  ;;  %vm631_vm2 = vcmp.eq.s32.totalorder %v2017_v16, %v2350_v62  ;;  %1442 = vmatpush.msk.msra.mxu3 %vm665_vm1, %v1661_v24  ;;  %vm650_vm0 = vcmp.eq.s32.totalorder %v2117_v42, %v2126_v48  ;;  %vm648_vm1 = vcmp.eq.s32.totalorder %v2117_v42, %v2153_v51 }
 0x114   : > { %1427 = vmatpush.msk.msra.mxu2 %vm631_vm2, %v1661_v24  ;;  %vm646_vm2 = vcmp.eq.s32.totalorder %v2117_v42, %v2180_v54 }
 0x115   : > { %1479 = vmatpush.msk.msrb.mxu1 %vm592_vm3, %v1661_v24 }
 0x116   : > { %1428 = vmatpush.msk.msra.mxu2 %vm629_vm4, %v1661_v24  ;;  %vm644_vm4 = vcmp.eq.s32.totalorder %v2117_v42, %v2214_v20 }
 0x117   : > { %1480 = vmatpush.msk.msrb.mxu1 %vm590_vm5, %v1661_v24  ;;  %vm684_vm5 = vcmp.eq.s32.totalorder %v2117_v42, %v2121_v47 }
 0x118   : > { %1071 = vmatmul.f32.vlgmr.msrb.gmra.mxu1 %v948_v11 }
 0x119   : > { %v2370_v63 = vpop.permute.xlu1 %471 }
 0x11a   : > { %v2372_v0 = vpop.permute.xlu0 %525  ;;  %vm627_vm6 = vcmp.eq.s32.totalorder %v2017_v16, %v2370_v63 }
 0x11b   : > { %1429 = vmatpush.msk.msra.mxu2 %vm627_vm6, %v1661_v24  ;;  %vm663_vm7 = vcmp.eq.s32.totalorder %v2017_v16, %v2372_v0  ;;  %vm642_vm6 = vcmp.eq.s32.totalorder %v2117_v42, %v2248_v35 }
 0x11c   : > { %1443 = vmatpush.msk.msra.mxu3 %vm663_vm7, %v1661_v24  ;;  %vm682_vm7 = vcmp.eq.s32.totalorder %v2117_v42, %v2151_v50 }
 0x11e   : > { %1444 = vmatpush.msk.msra.mxu3 %vm661_vm8, %v1661_v24  ;;  %vm640_vm8 = vcmp.eq.s32.totalorder %v2117_v42, %v2274_v46 }
 0x121   : > { %v2385_v1 = vpop.permute.xlu1 %519 }
 0x122   : > { %v2390_v3 = vpop.permute.xlu0 %468  ;;  %vm659_vm9 = vcmp.eq.s32.totalorder %v2017_v16, %v2385_v1 }
 0x123   : > { %vm625_vm10 = vcmp.eq.s32.totalorder %v2017_v16, %v2390_v3  ;;  %1445 = vmatpush.msk.msra.mxu3 %vm659_vm9, %v1661_v24  ;;  %vm680_vm9 = vcmp.eq.s32.totalorder %v2117_v42, %v2178_v43 }
 0x124   : > { %1430 = vmatpush.msk.msra.mxu2 %vm625_vm10, %v1661_v24  ;;  %vm638_vm10 = vcmp.eq.s32.totalorder %v2117_v42, %v2298_v56 }
 0x126   : > { %1431 = vmatpush.msk.msra.mxu2 %vm623_vm11, %v1661_v24  ;;  %vm678_vm11 = vcmp.eq.s32.totalorder %v2117_v42, %v2211_v27 }
 0x129   : > { %v2404_v6 = vpop.permute.xlu1 %462 }
 0x12a   : > { %vm621_vm12 = vcmp.eq.s32.totalorder %v2017_v16, %v2404_v6  ;;  %v2410_v8 = vpop.permute.xlu0 %516 }
 0x12b   : > { %1432 = vmatpush.msk.msra.mxu2 %vm621_vm12, %v1661_v24  ;;  %vm657_vm13 = vcmp.eq.s32.totalorder %v2017_v16, %v2410_v8  ;;  %vm636_vm12 = vcmp.eq.s32.totalorder %v2117_v42, %v2267_v37 }
 0x12c   : > { %1446 = vmatpush.msk.msra.mxu3 %vm657_vm13, %v1661_v24  ;;  %1011 = vmatmul.f32.vlgmr.msra.gmra.mxu2 %v2412_v9  ;;  %vm676_vm13 = vcmp.eq.s32.totalorder %v2117_v42, %v2245_v13 }
 0x12d   : > { %1481 = vmatpush.msk.msrb.mxu2 %vm652_vm14, %v1661_v24  ;;  %vm634_vm14 = vcmp.eq.s32.totalorder %v2117_v42, %v2319_v57 }
 0x12e   : > { %1447 = vmatpush.msk.msra.mxu3 %vm655_vm15, %v1661_v24  ;;  %vm674_vm15 = vcmp.eq.s32.totalorder %v2117_v42, %v2270_v44 }
 0x12f   : > { %1482 = vmatpush.msk.msrb.mxu2 %vm650_vm0, %v1661_v24  ;;  %vm632_vm0 = vcmp.eq.s32.totalorder %v2117_v42, %v2350_v62 }
 0x131   : > { %1483 = vmatpush.msk.msrb.mxu2 %vm648_vm1, %v1661_v24  ;;  %vm672_vm1 = vcmp.eq.s32.totalorder %v2117_v42, %v2292_v53 }
 0x132   : > { %v2433_v12 = vpop.permute.xlu0 %510 }
 0x133   : > { %1484 = vmatpush.msk.msrb.mxu2 %vm646_vm2, %v1661_v24  ;;  %vm653_vm3 = vcmp.eq.s32.totalorder %v2017_v16, %v2433_v12  ;;  %vm630_vm2 = vcmp.eq.s32.totalorder %v2117_v42, %v2333_v59 }
 0x134   : > { %1448 = vmatpush.msk.msra.mxu3 %vm653_vm3, %v1661_v24  ;;  %vm670_vm3 = vcmp.eq.s32.totalorder %v2117_v42, %v2323_v58 }
 0x135   : > { %1485 = vmatpush.msk.msrb.mxu2 %vm644_vm4, %v1661_v24  ;;  %1031 = vmatmul.f32.vlgmr.msra.gmra.mxu3 %v950_v14  ;;  %vm628_vm4 = vcmp.eq.s32.totalorder %v2117_v42, %v2370_v63 }
 0x136   : > { %1497 = vmatpush.msk.msrb.mxu3 %vm684_vm5, %v1661_v24  ;;  %vm668_vm5 = vcmp.eq.s32.totalorder %v2117_v42, %v2296_v55 }
 0x137   : > { %1486 = vmatpush.msk.msrb.mxu2 %vm642_vm6, %v1661_v24  ;;  %vm626_vm6 = vcmp.eq.s32.totalorder %v2117_v42, %v2390_v3 }
 0x138   : > { %1498 = vmatpush.msk.msrb.mxu3 %vm682_vm7, %v1661_v24  ;;  %vm666_vm7 = vcmp.eq.s32.totalorder %v2117_v42, %v2346_v60 }
 0x139   : > { %1487 = vmatpush.msk.msrb.mxu2 %vm640_vm8, %v1661_v24  ;;  %vm624_vm8 = vcmp.eq.s32.totalorder %v2117_v42, %v2383_v52 }
 0x13a   : > { %1499 = vmatpush.msk.msrb.mxu3 %vm680_vm9, %v1661_v24  ;;  %vm664_vm9 = vcmp.eq.s32.totalorder %v2117_v42, %v2372_v0 }
 0x13b   : > { %1488 = vmatpush.msk.msrb.mxu2 %vm638_vm10, %v1661_v24  ;;  %vm622_vm10 = vcmp.eq.s32.totalorder %v2117_v42, %v2404_v6 }
 0x13c   : > { %1500 = vmatpush.msk.msrb.mxu3 %vm678_vm11, %v1661_v24  ;;  %vm662_vm11 = vcmp.eq.s32.totalorder %v2117_v42, %v2366_v61 }
 0x13d   : > { %1489 = vmatpush.msk.msrb.mxu2 %vm636_vm12, %v1661_v24  ;;  %vm660_vm12 = vcmp.eq.s32.totalorder %v2117_v42, %v2385_v1 }
 0x13e   : > { %1501 = vmatpush.msk.msrb.mxu3 %vm676_vm13, %v1661_v24  ;;  %vm658_vm13 = vcmp.eq.s32.totalorder %v2117_v42, %v2410_v8 }
 0x13f   : > { %1490 = vmatpush.msk.msrb.mxu2 %vm634_vm14, %v1661_v24  ;;  %vm656_vm14 = vcmp.eq.s32.totalorder %v2117_v42, %v2406_v7 }
 0x140   : > { %1502 = vmatpush.msk.msrb.mxu3 %vm674_vm15, %v1661_v24  ;;  %vm654_vm15 = vcmp.eq.s32.totalorder %v2117_v42, %v2433_v12 }
 0x141   : > { %1491 = vmatpush.msk.msrb.mxu2 %vm632_vm0, %v1661_v24  ;;  %vm1118_vm0 = vcmask 1043456  }
 0x142   : > { %1503 = vmatpush.msk.msrb.mxu3 %vm672_vm1, %v1661_v24  ;;  %v1132_v42 = vsel %vm1118_vm0, %v1129_v40, %v1131_v41 }
 0x143   : > { %1492 = vmatpush.msk.msrb.mxu2 %vm630_vm2, %v1661_v24 }
 0x144   : > { %1504 = vmatpush.msk.msrb.mxu3 %vm670_vm3, %v1661_v24 }
 0x145   : > { %1493 = vmatpush.msk.msrb.mxu2 %vm628_vm4, %v1661_v24 }
 0x146   : > { %1505 = vmatpush.msk.msrb.mxu3 %vm668_vm5, %v1661_v24 }
 0x147   : > { %1494 = vmatpush.msk.msrb.mxu2 %vm626_vm6, %v1661_v24 }
 0x148   : > { %1506 = vmatpush.msk.msrb.mxu3 %vm666_vm7, %v1661_v24 }
 0x149   : > { %1495 = vmatpush.msk.msrb.mxu2 %vm624_vm8, %v1661_v24 }
 0x14a   : > { %1507 = vmatpush.msk.msrb.mxu3 %vm664_vm9, %v1661_v24 }
 0x14b   : > { %1496 = vmatpush.msk.msrb.mxu2 %vm622_vm10, %v1661_v24 }
 0x14c   : > { %1508 = vmatpush.msk.msrb.mxu3 %vm662_vm11, %v1661_v24  ;;  %1091 = vmatmul.f32.vlgmr.msrb.gmra.mxu2 %v2412_v9 }
 0x14e   : > { %1509 = vmatpush.msk.msrb.mxu3 %vm660_vm12, %v1661_v24 }
 0x150   : > { %1510 = vmatpush.msk.msrb.mxu3 %vm658_vm13, %v1661_v24 }
 0x152   : > { %1511 = vmatpush.msk.msrb.mxu3 %vm656_vm14, %v1661_v24  ;;  %v972_v16 = vpop.f32.mrf.mxu0 }
 0x154   : > { %1512 = vmatpush.msk.msrb.mxu3 %vm654_vm15, %v1661_v24 }
 0x155   : > { %1111 = vmatmul.f32.vlgmr.msrb.gmra.mxu3 %v950_v14 }
 0x171   : > { %v1052_v19 = vpop.f32.mrf.mxu0 }
 0x175   : > { %v992_v17 = vpop.f32.mrf.mxu1 }
 0x176   : > { %v993_v25 = vadd.f32 %v992_v17, %v972_v16 }
 0x195   : > { %v1072_v22 = vpop.f32.mrf.mxu1 }
 0x196   : > { %v1073_v23 = vadd.f32 %v1072_v22, %v1052_v19 }
 0x1af   : > { %v1012_v18 = vpop.f32.mrf.mxu2 }
 0x1b0   : > { %v1013_v28 = vadd.f32 %v1012_v18, %v993_v25 }
 0x1b8   : > { %v1032_v21 = vpop.f32.mrf.mxu3 }
 0x1b9   : > { %v1033_v32 = vadd.f32 %v1032_v21, %v1013_v28 }
 0x1cf   : > { %v1092_v24 = vpop.f32.mrf.mxu2 }
 0x1d0   : > { %v1093_v26 = vadd.f32 %v1092_v24, %v1073_v23 }
 0x1d8   : > { %v1112_v29 = vpop.f32.mrf.mxu3 }
 0x1d9   : > { %v1113_v30 = vadd.f32 %v1112_v29, %v1093_v26 }
 0x1db   : > { %v1117_v33 = vrot.slane %v1113_v30, 4 }
 0x1dd   : > { %v1119_v38 = vsel %vm1118_vm0, %v1033_v32, %v1117_v33 }
 0x1de   : > { %v1121_v39 = vadd.f32 %v1119_v38, %v941_v36 }
 0x1e0   : > { %1122 = vst [vmem:[%s2527_s23] sm:$0x77] %v1121_v39 }
 0x1e7   : > { %v1126_v45 = vld [vmem:[%s2527_s23] sm:$0x77] }
 0x1e8   : > { %v1134_v47 = vmul.f32 %v1132_v42, %v1126_v45 }
 0x1ea   : > { %1135 = vst [vmem:[%s2527_s23] sm:$0x77] %v1134_v47 }
 0x1eb   : > { %1607 = shalt.err (!%p1604_p5)
}
 0x1ec   : > { %1519 = dma.vmem_to_hbm [thread:$0]  (%p1723_p4), %s1151_s7, 128, %s1153_s8, %s1137_s9  }
 0x1ed PF: > { %p1525_p6 = scmp.ge.s32.totalorder %s1658_s17, 2  ;;  %s1164_s19 = sand.u32 1, %s1638_s12  }
 0x1ee   : > { %s1165_s23 = scalar_lea.sflag [#allocation3], %s1164_s19 }
 0x1ef   : > { %p1522_p7 = pnand %p1525_p6, %p1730_p8 }
 0x1f1   : > { %p1523_p9 = pneg %p1522_p7 }
 0x1f3   : > { %1633 = dma.done.wait (%p1523_p9), %s1165_s23, 128  }
 0x1f4   : > { %1635 = vsyncadd (%p1523_p9), %s1165_s23, 4294967168  ;;  %s16_s17 = sadd.s32 1, %s1658_s17   ;;  %s2583_s12 = smov %s1642_s13 }
 0x1f5   : > { %p13_p10 = scmp.ge.s32.totalorder %s16_s17, 4   ;;  %s2584_s13 = smov %s1646_s14 }
 0x1f6   : > { %s2585_s14 = smov %s1736_s25  ;;  %s2586_s15 = smov %s1654_s16 }
 0x1f7   : > { %s2587_s16 = smov %s2589_s20  ;;  %15 = sbr.rel (!%p13_p10) target bundleno = 4 (0x4), region = 82 }
 0x1fc   :  { %1171 = vsyncpa [#allocation3], 1 }
 0x1fd   :  { %1173 = vsyncpa [#allocation3 + $0x1], 1 }

</bundles_post_ra>
